<compile_context>
chip_gen: v7x
topology: tpu7x:2x2x1
jax: 0.10.0
libtpu: 0.0.40
codegen_flags: <defaults>
</compile_context>

<pallas_src>
import jax
import jax.numpy as jnp
from jax.experimental import pallas as pl
from jax.experimental.pallas import tpu as pltpu

INPUT_NUM = 100
HIDDEN_NUM = 64
OUTPUT_NUM = 2

DEFAULT_BLOCK_B = 4096   # max rows per grid step (review: 4096-8192)
MIN_GRID_STEPS = 4       # >=2 steps per TensorCore on v7x when B allows it


def _round_up(n, m):
    return ((n + m - 1) // m) * m


def _choose_tb(B, block_b):
    """Pick the batch block size.

    - B <= 8: one full-extent block (always a legal block shape).
    - otherwise: aim for >= MIN_GRID_STEPS grid steps (v7x megacore split),
      rows a multiple of 8 (sublane), capped at block_b (VMEM / overhead
      amortization balance).
    """
    if B <= 8:
        return B
    tb = _round_up(pl.cdiv(B, MIN_GRID_STEPS), 8)
    return max(8, min(tb, block_b))


def mlp_logsoftmax_kernel(x_ref, w1_ref, b1_ref, w2_ref, b2_ref, o_ref):
    # fc1: K = 100 contraction straight off the raw input block; f32
    # accumulation on the MXU.  Compute has huge slack in this HBM-bound
    # regime, so no bf16/padding tricks are needed here.
    h = jnp.dot(x_ref[...], w1_ref[...], preferred_element_type=jnp.float32)
    h = jnp.maximum(h + b1_ref[...], 0.0)                       # (tb, 64) f32

    # fc2 (tiny 64 x 2)
    logits = jnp.dot(h, w2_ref[...],
                     preferred_element_type=jnp.float32) + b2_ref[...]  # (tb, 2)

    # Exact 2-class log_softmax, no cross-lane reduction over lane padding:
    #   lse = max(l0, l1) + log1p(exp(-|l0 - l1|))
    l0 = logits[:, 0:1]
    l1 = logits[:, 1:2]
    m = jnp.maximum(l0, l1)
    lse = m + jnp.log1p(jnp.exp(-jnp.abs(l0 - l1)))
    o_ref[...] = (logits - lse).astype(o_ref.dtype)


def net_forward(x, w1, b1, w2, b2, *, block_b=DEFAULT_BLOCK_B):
    """x: (B, 100); w1: (100, 64); b1: (64,); w2: (64, 2); b2: (2,).

    x may be float32 (default, parity with the PyTorch module) or bfloat16
    (caller's choice, e.g. on bandwidth-starved v5e).  Returns (B, 2) f32
    log-probabilities.
    """
    B = x.shape[0]
    tb = _choose_tb(B, block_b)
    grid = (pl.cdiv(B, tb),)   # ragged trailing block handled by Pallas

    # Small, one-time weight prep (no pass over the dominant x stream).
    w1_k = w1.astype(x.dtype)                                   # (100, 64)
    b1_2d = b1.reshape(1, HIDDEN_NUM).astype(jnp.float32)       # (1, 64)
    w2_f32 = w2.astype(jnp.float32)                             # (64, 2)
    b2_2d = b2.reshape(1, OUTPUT_NUM).astype(jnp.float32)       # (1, 2)

    out = pl.pallas_call(
        mlp_logsoftmax_kernel,
        out_shape=jax.ShapeDtypeStruct((B, OUTPUT_NUM), jnp.float32),
        grid=grid,
        in_specs=[
            pl.BlockSpec((tb, INPUT_NUM), lambda i: (i, 0)),              # x (streamed)
            pl.BlockSpec((INPUT_NUM, HIDDEN_NUM), lambda i: (0, 0)),      # w1 (resident)
            pl.BlockSpec((1, HIDDEN_NUM), lambda i: (0, 0)),              # b1 (resident)
            pl.BlockSpec((HIDDEN_NUM, OUTPUT_NUM), lambda i: (0, 0)),     # w2 (resident)
            pl.BlockSpec((1, OUTPUT_NUM), lambda i: (0, 0)),              # b2 (resident)
        ],
        out_specs=pl.BlockSpec((tb, OUTPUT_NUM), lambda i: (i, 0)),
        compiler_params=pltpu.CompilerParams(
            dimension_semantics=("parallel",),
            vmem_limit_bytes=32 * 1024 * 1024,
        ),
    )(x, w1_k, b1_2d, w2_f32, b2_2d)

    return out


def init_params(key):
    """PyTorch nn.Linear-style init: U[-1/sqrt(fan_in), 1/sqrt(fan_in)].

    Weights are stored as (in, out) so the kernel computes x @ W (equivalent
    to PyTorch's x @ W.T with its (out, in) storage).
    """
    k1, k2, k3, k4 = jax.random.split(key, 4)
    bound1 = 1.0 / (INPUT_NUM ** 0.5)
    bound2 = 1.0 / (HIDDEN_NUM ** 0.5)
    w1 = jax.random.uniform(k1, (INPUT_NUM, HIDDEN_NUM), jnp.float32, -bound1, bound1)
    b1 = jax.random.uniform(k2, (HIDDEN_NUM,), jnp.float32, -bound1, bound1)
    w2 = jax.random.uniform(k3, (HIDDEN_NUM, OUTPUT_NUM), jnp.float32, -bound2, bound2)
    b2 = jax.random.uniform(k4, (OUTPUT_NUM,), jnp.float32, -bound2, bound2)
    return w1, b1, w2, b2


def _reference(x, w1, b1, w2, b2):
    h = jnp.maximum(x @ w1 + b1, 0.0)
    return jax.nn.log_softmax(h @ w2 + b2, axis=1)


if __name__ == "__main__":
    key = jax.random.PRNGKey(0)
    kx1, kx2, kp = jax.random.split(key, 3)

    w1, b1, w2, b2 = init_params(kp)

    # Small primary test (single full-extent block path).
    B = 8
    x = jax.random.normal(kx1, (B, INPUT_NUM), jnp.float32)
    out = jax.block_until_ready(net_forward(x, w1, b1, w2, b2))
    assert out.shape == (B, OUTPUT_NUM)
    ref = _reference(x, w1, b1, w2, b2)
    assert jnp.allclose(out, ref, atol=1e-2, rtol=1e-2), (
        f"max abs err {jnp.max(jnp.abs(out - ref))}")
    # log-probs must exponentiate-sum to 1 per row
    assert jnp.allclose(jnp.sum(jnp.exp(out), axis=1), 1.0, atol=1e-3)

    # Multi-step grid with a ragged trailing block (B not a multiple of tb).
    B2 = 20
    x2 = jax.random.normal(kx2, (B2, INPUT_NUM), jnp.float32)
    out2 = jax.block_until_ready(net_forward(x2, w1, b1, w2, b2))
    assert out2.shape == (B2, OUTPUT_NUM)
    ref2 = _reference(x2, w1, b1, w2, b2)
    assert jnp.allclose(out2, ref2, atol=1e-2, rtol=1e-2), (
        f"max abs err {jnp.max(jnp.abs(out2 - ref2))}")
    assert jnp.allclose(jnp.sum(jnp.exp(out2), axis=1), 1.0, atol=1e-3)

    print("KERNEL_OK")
</pallas_src>

<mosaic_0001>
module attributes {stable_mosaic.version = 11 : i64} {
  func.func @mlp_logsoftmax_kernel(%arg0: i32, %arg1: memref<8x100xf32, #tpu.memory_space<vmem>>, %arg2: memref<100x64xf32, #tpu.memory_space<vmem>>, %arg3: memref<1x64xf32, #tpu.memory_space<vmem>>, %arg4: memref<64x2xf32, #tpu.memory_space<vmem>>, %arg5: memref<1x2xf32, #tpu.memory_space<vmem>>, %arg6: memref<8x2xf32, #tpu.memory_space<vmem>>) attributes {dimension_semantics = [#tpu.dimension_semantics<parallel>], iteration_bounds = array<i64: 1>, scalar_prefetch = 0 : i64, scratch_operands = 0 : i64, tpu.core_type = #tpu.core_type<tc>, window_params = [{transform_indices = @transform_0, window_bounds = array<i64: 8, 100>}, {pipeline_mode = #tpu.pipeline_mode<synchronous>, transform_indices = @transform_1, window_bounds = array<i64: 100, 64>}, {pipeline_mode = #tpu.pipeline_mode<synchronous>, transform_indices = @transform_2, window_bounds = array<i64: 1, 64>}, {pipeline_mode = #tpu.pipeline_mode<synchronous>, transform_indices = @transform_3, window_bounds = array<i64: 64, 2>}, {pipeline_mode = #tpu.pipeline_mode<synchronous>, transform_indices = @transform_4, window_bounds = array<i64: 1, 2>}, {transform_indices = @transform_5, window_bounds = array<i64: 8, 2>}]} {
    %c0 = arith.constant 0 : index
    %c0_0 = arith.constant 0 : index
    %0 = vector.load %arg1[%c0, %c0_0] : memref<8x100xf32, #tpu.memory_space<vmem>>, vector<8x100xf32>
    %c0_1 = arith.constant 0 : index
    %c0_2 = arith.constant 0 : index
    %1 = vector.load %arg2[%c0_1, %c0_2] : memref<100x64xf32, #tpu.memory_space<vmem>>, vector<100x64xf32>
    %cst = arith.constant dense<0.000000e+00> : vector<8x64xf32>
    %2 = tpu.matmul %0, %1, %cst {dimension_numbers = #tpu.dot_dimension_numbers<[1], [0], [0], [1], [0, 0, 1, 1], [], []>} : vector<8x100xf32>, vector<100x64xf32>, vector<8x64xf32> -> vector<8x64xf32>
    %c0_3 = arith.constant 0 : index
    %c0_4 = arith.constant 0 : index
    %3 = vector.load %arg3[%c0_3, %c0_4] : memref<1x64xf32, #tpu.memory_space<vmem>>, vector<1x64xf32>
    %4 = vector.broadcast %3 : vector<1x64xf32> to vector<8x64xf32>
    %5 = arith.addf %2, %4 : vector<8x64xf32>
    %cst_5 = arith.constant 0.000000e+00 : f32
    %6 = vector.broadcast %cst_5 : f32 to vector<8x64xf32>
    %7 = arith.maximumf %5, %6 : vector<8x64xf32>
    %c0_6 = arith.constant 0 : index
    %c0_7 = arith.constant 0 : index
    %8 = vector.load %arg4[%c0_6, %c0_7] : memref<64x2xf32, #tpu.memory_space<vmem>>, vector<64x2xf32>
    %cst_8 = arith.constant dense<0.000000e+00> : vector<8x2xf32>
    %9 = tpu.matmul %7, %8, %cst_8 {dimension_numbers = #tpu.dot_dimension_numbers<[1], [0], [0], [1], [0, 0, 1, 1], [], []>} : vector<8x64xf32>, vector<64x2xf32>, vector<8x2xf32> -> vector<8x2xf32>
    %c0_9 = arith.constant 0 : index
    %c0_10 = arith.constant 0 : index
    %10 = vector.load %arg5[%c0_9, %c0_10] : memref<1x2xf32, #tpu.memory_space<vmem>>, vector<1x2xf32>
    %11 = vector.broadcast %10 : vector<1x2xf32> to vector<8x2xf32>
    %12 = arith.addf %9, %11 : vector<8x2xf32>
    %13 = vector.extract_strided_slice %12 {offsets = [0, 0], sizes = [8, 1], strides = [1, 1]} : vector<8x2xf32> to vector<8x1xf32>
    %14 = vector.extract_strided_slice %12 {offsets = [0, 1], sizes = [8, 1], strides = [1, 1]} : vector<8x2xf32> to vector<8x1xf32>
    %15 = arith.maximumf %13, %14 : vector<8x1xf32>
    %16 = arith.subf %13, %14 : vector<8x1xf32>
    %17 = math.absf %16 : vector<8x1xf32>
    %cst_11 = arith.constant 0.000000e+00 : f32
    %18 = vector.broadcast %cst_11 : f32 to vector<8x1xf32>
    %19 = arith.subf %18, %17 : vector<8x1xf32>
    %20 = math.exp %19 : vector<8x1xf32>
    %21 = math.log1p %20 : vector<8x1xf32>
    %22 = arith.addf %15, %21 : vector<8x1xf32>
    %23 = vector.broadcast %22 : vector<8x1xf32> to vector<8x2xf32>
    %24 = arith.subf %12, %23 : vector<8x2xf32>
    %c0_12 = arith.constant 0 : index
    %c0_13 = arith.constant 0 : index
    %25 = vector.load %arg6[%c0_12, %c0_13] : memref<8x2xf32, #tpu.memory_space<vmem>>, vector<8x2xf32>
    tpu.vector_store %arg6[%c0_12, %c0_13], %24 {strides = array<i32>} : memref<8x2xf32, #tpu.memory_space<vmem>>, vector<8x2xf32>,
    return
  }
  func.func @transform_0(%arg0: i32) -> (i32, i32) {
    %c0_i32 = arith.constant 0 : i32
    %c0_i32_0 = arith.constant 0 : i32
    return %arg0, %c0_i32 : i32, i32
  }
  func.func @transform_1(%arg0: i32) -> (i32, i32) {
    %c0_i32 = arith.constant 0 : i32
    %c0_i32_0 = arith.constant 0 : i32
    %c0_i32_1 = arith.constant 0 : i32
    return %c0_i32, %c0_i32_0 : i32, i32
  }
  func.func @transform_2(%arg0: i32) -> (i32, i32) {
    %c0_i32 = arith.constant 0 : i32
    %c0_i32_0 = arith.constant 0 : i32
    %c0_i32_1 = arith.constant 0 : i32
    return %c0_i32, %c0_i32_0 : i32, i32
  }
  func.func @transform_3(%arg0: i32) -> (i32, i32) {
    %c0_i32 = arith.constant 0 : i32
    %c0_i32_0 = arith.constant 0 : i32
    %c0_i32_1 = arith.constant 0 : i32
    return %c0_i32, %c0_i32_0 : i32, i32
  }
  func.func @transform_4(%arg0: i32) -> (i32, i32) {
    %c0_i32 = arith.constant 0 : i32
    %c0_i32_0 = arith.constant 0 : i32
    %c0_i32_1 = arith.constant 0 : i32
    return %c0_i32, %c0_i32_0 : i32, i32
  }
  func.func @transform_5(%arg0: i32) -> (i32, i32) {
    %c0_i32 = arith.constant 0 : i32
    %c0_i32_0 = arith.constant 0 : i32
    return %arg0, %c0_i32 : i32, i32
  }
}

</mosaic_0001>

<bundles_post_ra>
// kernel: tpu_custom_call.1
= control target key start
LH: loop header
LB: loop body
LE: loop exit
PB: predicated region body
PF: predicated region fallthrough
CT: control target
= control target key end

     0   :  { %v357_v0 = vmov 0.0|0.0   ;;  %vm358_vm0 = vmmov 0   ;;  %v359_v4 = vmov 0.0   ;;  %vm45_vm1 = vcmask 1043456   ;;  %s467_s1 = inlined_call_operand.vmem [shape: f32[100,64], index: 1, kind: input, shape index: {}]   ;;  %s468_s3 = inlined_call_operand.vmem [shape: f32[64,2], index: 3, kind: input, shape index: {}]   ;;  %s469_s0 = inlined_call_operand.vmem [shape: f32[8,100], index: 0, kind: input, shape index: {}]   ;;  %s470_s2 = inlined_call_operand.vmem [shape: f32[1,64], index: 2, kind: input, shape index: {}]   ;;  %s471_s4 = inlined_call_operand.vmem [shape: f32[1,2], index: 4, kind: input, shape index: {}]   ;;  %s472_s5 = inlined_call_operand.vmem [shape: f32[8,2], index: 5, kind: output, shape index: {}]  }
   0x1   :  { %317 = vmatprep.subr.bf16.mxu0 %v357_v0  ;;  %v21_v1 = vld [vmem:[%s467_s1] sm:$0xff]  ;;  %v22_v2 = vld [vmem:[%s467_s1 + $0x8] sm:$0xff]  ;;  %v23_v3 = vld [vmem:[%s467_s1 + $0x10] sm:$0xff]  ;;  %295 = vmatprep.mubr.msk.f32.mxu0 %vm358_vm0, %v359_v4  ;;  %vm41_vm2 = vcmask 818176   ;;  %vm135_vm3 = vcmask 523264   ;;  %v361_v43 = vmov 0  }
   0x2   :  { %v318_v5 = vpack.c.bf16 %v22_v2, %v21_v1  ;;  %v24_v6 = vld [vmem:[%s467_s1 + $0x18] sm:$0xff]  ;;  %335 = vmatprep.subr.bf16.mxu1 %v357_v0  ;;  %314 = vmatprep.mubr.msk.f32.mxu1 %vm358_vm0, %v359_v4  ;;  %v25_v8 = vld [vmem:[%s467_s1 + $0x20] sm:$0xff]  ;;  %v26_v9 = vld [vmem:[%s467_s1 + $0x28] sm:$0xff]  ;;  %vm235_vm5 = vcmask 15360  }
   0x3   :  { %v321_v7 = vpack.c.bf16 %v24_v6, %v23_v3  ;;  %v120_v10 = vld [vmem:[%s468_s3] sm:$0xff]  ;;  %v121_v11 = vld [vmem:[%s468_s3 + $0x8] sm:$0xff]  ;;  %v122_v12 = vld [vmem:[%s468_s3 + $0x10] sm:$0xff]  ;;  %v324_v15 = vpack.c.bf16 %v26_v9, %v25_v8  ;;  %352 = vset.pattern.permute.xlu0 %v361_v43 }
   0x4   :  { %319 = vmatpush3.bf16.msra.mxu0 %v318_v5  ;;  %v123_v13 = vld [vmem:[%s468_s3 + $0x18] sm:$0xff]  ;;  %v336_v14 = vpack.c.bf16 %v121_v11, %v120_v10  ;;  %v27_v16 = vld [vmem:[%s467_s1 + $0x30] sm:$0xff]  ;;  %v124_v19 = vld [vmem:[%s468_s3 + $0x20] sm:$0xff] }
   0x5   :  { %320 = vmatprep.subr.bf16.mxu0 %v357_v0  ;;  %v28_v17 = vld [vmem:[%s467_s1 + $0x38] sm:$0xff]  ;;  %v339_v18 = vpack.c.bf16 %v123_v13, %v122_v12  ;;  %v125_v20 = vld [vmem:[%s468_s3 + $0x28] sm:$0xff]  ;;  %v29_v22 = vld [vmem:[%s467_s1 + $0x40] sm:$0xff] }
   0x6   :  { %337 = vmatpush3.bf16.msra.mxu1 %v336_v14  ;;  %v327_v21 = vpack.c.bf16 %v28_v17, %v27_v16  ;;  %v30_v23 = vld [vmem:[%s467_s1 + $0x48] sm:$0xff]  ;;  %v342_v24 = vpack.c.bf16 %v125_v20, %v124_v19  ;;  %v31_v26 = vld [vmem:[%s467_s1 + $0x50] sm:$0xff]  ;;  %v32_v27 = vld [vmem:[%s467_s1 + $0x58] sm:$0xff] }
   0x7   :  { %338 = vmatprep.subr.bf16.mxu1 %v357_v0  ;;  %v330_v25 = vpack.c.bf16 %v30_v23, %v29_v22  ;;  %v333_v28 = vpack.c.bf16 %v32_v27, %v31_v26  ;;  %v33_v29 = vld [vmem:[%s467_s1 + $0x60] sm:$0xf]  ;;  %v126_v31 = vld [vmem:[%s468_s3 + $0x30] sm:$0xff]  ;;  %v127_v32 = vld [vmem:[%s468_s3 + $0x38] sm:$0xff]  ;;  %s360_s3 = smov 127  }
   0x8   :  { %322 = vmatpush3.bf16.msra.mxu0 %v321_v7  ;;  %v20_v30 = vld [vmem:[%s469_s0] sm:$0xff]  ;;  %v345_v33 = vpack.c.bf16 %v127_v32, %v126_v31 }
   0x9   :  { %323 = vmatprep.subr.bf16.mxu0 %v357_v0  ;;  %v241_v34 = vld [vmem:[%s470_s2] ss:$0 sm:$0xff] }
   0xa   :  { %340 = vmatpush3.bf16.msra.mxu1 %v339_v18  ;;  %v244_v39 = vld [vmem:[%s471_s4] ss:$0 sm:$0xff] }
   0xb   :  { %341 = vmatprep.subr.bf16.mxu1 %v357_v0 }
   0xc   :  { %325 = vmatpush3.bf16.msra.mxu0 %v324_v15 }
   0xd   :  { %326 = vmatprep.subr.bf16.mxu0 %v357_v0 }
   0xe   :  { %343 = vmatpush3.bf16.msra.mxu1 %v342_v24 }
   0xf   :  { %344 = vmatprep.subr.bf16.mxu1 %v357_v0 }
  0x10   :  { %328 = vmatpush3.bf16.msra.mxu0 %v327_v21 }
  0x11   :  { %329 = vmatprep.subr.bf16.mxu0 %v357_v0 }
  0x12   :  { %346 = vmatpush3.bf16.msra.mxu1 %v345_v33 }
  0x14   :  { %331 = vmatpush3.bf16.msra.mxu0 %v330_v25 }
  0x15   :  { %332 = vmatprep.subr.bf16.mxu0 %v357_v0 }
  0x18   :  { %334 = vmatpush3.bf16.msra.mxu0 %v333_v28 }
  0x19   :  { %293 = vmatprep.subr.mxu0 %v359_v4 }
  0x1c   :  { %294 = vmatpush3.msk.msra.mxu0 %vm45_vm1, %v33_v29 }
  0x1d   :  { %296 = vmatmul.mubr.msk.f32.vlgmr.msra.gmra.mrb[0].mxu0 %vm41_vm2, %v20_v30 }
  0xf0   :  { %v115_v35 = vpop.f32.mrb[0].mxu0 }
  0xf1   :  { %v116_v36 = vadd.f32 %v241_v34, %v115_v35  ;;  %v297_v37 = vpop.f32.mrb[1].mxu0 }
  0xf3   :  { %v119_v38 = vmax.f32 %v116_v36, 0.0 }
  0xf5   :  { %315 = vmatmul.mubr.msk.f32.vlgmr.msra.gmra.mrb[0].mxu1 %vm135_vm3, %v119_v38 }
 0x1c8   :  { %v205_v40 = vpop.f32.mrb[0].mxu1 }
 0x1c9   :  { %v206_v41 = vadd.f32 %v244_v39, %v205_v40  ;;  %v316_v42 = vpop.f32.mrb[1].mxu1 }
 0x1cb   :  { %210 = vrot.lane.b32.xlu0 %v206_v41, %s360_s3 }
 0x23d   :  { %v211_v44 = vpop.permute.xlu0 %210 }
 0x23e   :  { %v214_v45 = vsub.f32 %v206_v41, %v211_v44  ;;  %v213_v57 = vmax.f32 %v206_v41, %v211_v44 }
 0x240   :  { %v215_v46 = vand.u32 2147483647, %v214_v45 }
 0x242   :  { %v216_v47 = vsub.f32 0.0, %v215_v46 }
 0x244   :  { %v217_v48 = vmul.f32 1.442695, %v216_v47 }
 0x246   :  { %353 = vpow2.f32 %v217_v48 }
 0x250   :  { %v354_v49 = vpop.eup %353 }
 0x251   :  { %v219_v50 = vadd.f32 1.0, %v354_v49  ;;  %v222_v51 = vmul.f32 -0.5, %v354_v49  ;;  %v225_v53 = vand.u32 2147483647, %v354_v49 }
 0x253   :  { %355 = vlog2.f32 %v219_v50  ;;  %v223_v52 = vadd.f32 1.0, %v222_v51  ;;  %vm226_vm4 = vcmp.lt.f32.partialorder %v225_v53, 0.0004427343 }
 0x255   :  { %v224_v56 = vmul.f32 %v354_v49, %v223_v52 }
 0x25d   :  { %v356_v54 = vpop.eup %355 }
 0x25e   :  { %v221_v55 = vmul.f32 0.6931472, %v356_v54 }
 0x260   :  { %v227_v58 = vsel %vm226_vm4, %v224_v56, %v221_v55 }
 0x261   :  { %v228_v59 = vadd.f32 %v227_v58, %v213_v57 }
 0x263   :  { %231 = vperm.xlu0 %352, %v228_v59  }
 0x2e2   :  { %v232_v60 = vpop.permute.xlu0 %231 }
 0x2e3   :  { %v234_v61 = vsub.f32 %v206_v41, %v232_v60 }
 0x2e5   :  { %236 = vst.msk [vmem:[%s472_s5] sm:$0xff] %vm235_vm5, %v234_v61 }

</bundles_post_ra>
